<compile_context>
chip_gen: v7x
topology: tpu7x:2x2x1
jax: 0.10.0
libtpu: 0.0.40
codegen_flags: <defaults>
</compile_context>

<pallas_src>
import jax
import jax.numpy as jnp
import numpy as np
from jax import lax
from jax.experimental import pallas as pl
from jax.experimental.pallas import tpu as pltpu

# ---- small config (mirrors configs.* used by the module) -------------------
B = 2             # batch_size
T = 16            # seq_len / context_window
N = 4             # enc_in
P = 8             # pred_len / target_window
DFF = 8           # d_ff
NUM_KERNELS = 3   # Inception kernel sizes 1, 3, 5

# Distinct time offsets of the merged Inception taps: -(k-1) .. +(k-1)
OFFSETS = tuple(range(-(NUM_KERNELS - 1), NUM_KERNELS))
N_OFF = len(OFFSETS)

assert T & (T - 1) == 0, "in-kernel index math assumes T is a power of two"


# ----------------------------- exact GELU helpers ----------------------------
def _erf(z):
    # Abramowitz & Stegun 7.1.26 erf approximation (|error| < 1.5e-7), built
    # only from exp / mul / add / div / where so it always lowers in Mosaic.
    a = jnp.where(z >= 0.0, z, -z)
    t = 1.0 / (1.0 + 0.3275911 * a)
    poly = t * (0.254829592 + t * (-0.284496736 + t * (1.421413741
             + t * (-1.453152027 + t * 1.061405429))))
    e = 1.0 - poly * jnp.exp(-a * a)
    return jnp.where(z >= 0.0, e, -e)


def _gelu_exact(x):
    # matches torch nn.GELU() default: x * 0.5 * (1 + erf(x / sqrt(2)))
    return 0.5 * x * (1.0 + _erf(x * 0.7071067811865476))


# ------------------------------- Pallas kernel --------------------------------
def pdf2_kernel(x_ref, w1_ref, b1_ref, w2_ref, b2_ref, wsum_ref,
                wep_ref, bep_ref, out_ref, slab1_scr, slab2_scr):
    x = x_ref[...]                                          # (B*T, N) f32
    BT, Nc = x.shape
    row = lax.broadcasted_iota(jnp.int32, (BT, Nc), 0)
    t_idx = row & (T - 1)                                   # time index within batch

    # ---- compute_derivative_heatmaps: zero-padded 2nd derivative over time --
    xm1 = pltpu.roll(x, 1, axis=0)                          # x[t-1] (wrap masked below)
    xm2 = pltpu.roll(x, 2, axis=0)                          # x[t-2]
    d2 = jnp.where(t_idx == 0, 0.0,
                   jnp.where(t_idx == 1, x - xm1, x - 2.0 * xm1 + xm2))

    # ---- shifted-slab builder: (B*T, C) -> (B*T, N_OFF*C) -------------------
    def build_slab(h, scr):
        bt, c = h.shape
        ti = lax.broadcasted_iota(jnp.int32, (bt, c), 0) & (T - 1)
        for o_idx, off in enumerate(OFFSETS):
            if off == 0:
                piece = h
            else:
                piece = pltpu.roll(h, (-off) % bt, axis=0)  # piece[r] = h[r + off]
                valid = (ti < T - off) if off > 0 else (ti >= -off)
                piece = jnp.where(valid, piece, 0.0)        # conv zero padding
            scr[:, o_idx * c:(o_idx + 1) * c] = piece
        return scr[...]

    # ---- Inception_Block_V1 #1 (N -> DFF): ONE matmul + exact GELU ----------
    slab1 = build_slab(d2, slab1_scr)                       # (B*T, N_OFF*N)
    feat1 = jnp.dot(slab1, w1_ref[...],
                    preferred_element_type=jnp.float32) + b1_ref[...]
    feat1 = _gelu_exact(feat1)                              # (B*T, DFF)

    # ---- Inception_Block_V1 #2 (DFF -> N): ONE matmul -----------------------
    slab2 = build_slab(feat1, slab2_scr)                    # (B*T, N_OFF*DFF)
    feat2 = jnp.dot(slab2, w2_ref[...],
                    preferred_element_type=jnp.float32) + b2_ref[...]   # (B*T, N)

    # ---- per-batch weight fusion: scalar (w0 + w1) scale from SMEM ----------
    scale = jnp.full((BT, Nc), wsum_ref[0], jnp.float32)
    for b in range(1, B):
        scale = jnp.where(row >= b * T, wsum_ref[b], scale)
    sfeat2 = feat2 * scale

    # ---- fused epilogue: [backbone surrogate | heatmap_to_pred] in one dot --
    stacked = jnp.concatenate([x, sfeat2], axis=0)          # (2*B*T, N)
    out_ref[...] = jnp.dot(wep_ref[...], stacked,
                           preferred_element_type=jnp.float32) + bep_ref[...]


# --------------------------------- wrapper ------------------------------------
def pdf2_forward(x, params):
    w1, b1, w2, b2, wsum, wep, bep = params
    x_flat = x.reshape(B * T, N)

    vmem = pl.BlockSpec(memory_space=pltpu.MemorySpace.VMEM)
    smem = pl.BlockSpec(memory_space=pltpu.MemorySpace.SMEM)

    out_flat = pl.pallas_call(
        pdf2_kernel,
        out_shape=jax.ShapeDtypeStruct((B * P, N), jnp.float32),
        in_specs=[vmem, vmem, vmem, vmem, vmem, smem, vmem, vmem],
        out_specs=vmem,
        scratch_shapes=[
            pltpu.VMEM((B * T, N_OFF * N), jnp.float32),    # slab for block 1
            pltpu.VMEM((B * T, N_OFF * DFF), jnp.float32),  # slab for block 2
        ],
        cost_estimate=pl.CostEstimate(flops=30_000, transcendentals=300,
                                      bytes_accessed=8_192),
    )(x_flat, w1, b1, w2, b2, wsum, wep, bep)
    return out_flat.reshape(B, P, N)


# ------------------------ deterministic parameter init ------------------------
def init_params(key):
    ks = jax.random.split(key, 6)

    def pack_inception(k_w, k_b, c_in, c_out):
        # Because the heatmap spatial width is 1, only the centre width-column
        # of each (2i+1)x(2i+1) kernel contributes.  Taps of different kernels
        # that share a time offset are merged and the 1/NUM_KERNELS mean is
        # folded in, so each Inception block is a single matmul in the kernel.
        raw_w, raw_b = [], []
        w_eff = [jnp.zeros((c_in, c_out), jnp.float32) for _ in OFFSETS]
        for i in range(NUM_KERNELS):
            ksz = 2 * i + 1
            w = jax.random.normal(jax.random.fold_in(k_w, i),
                                  (c_out, c_in, ksz, ksz), jnp.float32) * 0.1
            b = jax.random.normal(jax.random.fold_in(k_b, i),
                                  (c_out,), jnp.float32) * 0.1
            raw_w.append(w)
            raw_b.append(b)
            center = w[:, :, :, i]                          # (c_out, c_in, ksz)
            for dh in range(ksz):
                o_idx = OFFSETS.index(dh - i)
                w_eff[o_idx] = w_eff[o_idx] + (jnp.transpose(center[:, :, dh])
                                               / float(NUM_KERNELS))
        w_packed = jnp.concatenate(w_eff, axis=0)           # (N_OFF*c_in, c_out)
        b_mean = jnp.mean(jnp.stack(raw_b), axis=0)[None, :]  # (1, c_out)
        return w_packed, b_mean, raw_w, raw_b

    w1, b1, raw_w1, raw_b1 = pack_inception(ks[0], ks[1], N, DFF)
    w2, b2, raw_w2, raw_b2 = pack_inception(ks[2], ks[3], DFF, N)

    # self.weights: (batch, 2); only its row-sum enters the forward pass.
    weights2 = jax.random.normal(jax.random.fold_in(ks[4], 0), (B, 2), jnp.float32)
    wsum = jnp.sum(weights2, axis=-1)                       # (B,) -> SMEM scalars

    # heatmap_to_pred: Conv1d(T, P, kernel_size=1)
    hpw = jax.random.normal(jax.random.fold_in(ks[4], 1), (P, T), jnp.float32) * 0.1
    hpb = jax.random.normal(jax.random.fold_in(ks[4], 2), (P, 1), jnp.float32) * 0.1

    # PDF_backbone2 surrogate: linear T -> P shared across channels.
    # TODO(synk): swap in the real PDF_backbone2 if its source becomes available.
    bbw = jax.random.normal(jax.random.fold_in(ks[5], 0), (P, T), jnp.float32) * 0.1
    bbb = jax.random.normal(jax.random.fold_in(ks[5], 1), (P, 1), jnp.float32) * 0.1

    # Fused, batch-block-diagonal epilogue: out = Wep @ [x_flat ; wsum_b*feat2] + bep
    eye_b = jnp.eye(B, dtype=jnp.float32)
    wep = jnp.concatenate([jnp.kron(eye_b, bbw), jnp.kron(eye_b, hpw)], axis=1)
    bep = jnp.tile(bbb + hpb, (B, 1))                       # (B*P, 1)

    kernel_params = (w1, b1, w2, b2, wsum, wep, bep)
    raw_params = (raw_w1, raw_b1, raw_w2, raw_b2, weights2, hpw, hpb, bbw, bbb)
    return kernel_params, raw_params


# ------------------------------ pure-JAX reference -----------------------------
def reference(x, raw_params):
    # Mirrors the PyTorch module: real 2-D convs on the width-1 heatmap, mean
    # over kernels, exact erf GELU, per-batch weight sum, 1x1 Conv1d, and the
    # same backbone surrogate as the kernel.
    raw_w1, raw_b1, raw_w2, raw_b2, weights2, hpw, hpb, bbw, bbb = raw_params

    d1 = x[:, 1:] - x[:, :-1]
    d1 = jnp.concatenate([jnp.zeros_like(d1[:, :1]), d1], axis=1)
    d2 = d1[:, 1:] - d1[:, :-1]
    d2 = jnp.concatenate([jnp.zeros_like(d2[:, :1]), d2], axis=1)
    heat = jnp.transpose(d2[..., None], (0, 2, 1, 3))       # (B, N, T, 1)

    def inception(h, ws, bs):
        outs = []
        for w, b in zip(ws, bs):
            pad = w.shape[2] // 2
            o = lax.conv_general_dilated(
                h, w, window_strides=(1, 1),
                padding=[(pad, pad), (pad, pad)],
                dimension_numbers=('NCHW', 'OIHW', 'NCHW'))
            outs.append(o + b[None, :, None, None])
        return jnp.mean(jnp.stack(outs), axis=0)

    f1 = inception(heat, raw_w1, raw_b1)
    f1 = jax.nn.gelu(f1, approximate=False)                 # torch nn.GELU() default
    f2 = inception(f1, raw_w2, raw_b2)                      # (B, N, T, 1)

    hf = jnp.transpose(f2, (0, 2, 1, 3))[..., 0]            # (B, T, N)
    final = hf * jnp.sum(weights2, axis=-1)[:, None, None]
    fh_pred = jnp.einsum('pt,btn->bpn', hpw, final) + hpb[None]
    bb = jnp.einsum('pt,btn->bpn', bbw, x) + bbb[None]
    return bb + fh_pred


if __name__ == "__main__":
    key = jax.random.PRNGKey(0)
    kx, kp = jax.random.split(key)
    x = jax.random.normal(kx, (B, T, N), jnp.float32)
    kernel_params, raw_params = init_params(kp)

    out = jax.block_until_ready(pdf2_forward(x, kernel_params))
    ref = reference(x, raw_params)

    assert out.shape == (B, P, N)
    np.testing.assert_allclose(np.asarray(out), np.asarray(ref),
                               rtol=1e-4, atol=1e-4)
    print("KERNEL_OK")
</pallas_src>

<mosaic_0001>
module attributes {stable_mosaic.version = 11 : i64} {
  func.func @pdf2_kernel(%arg0: memref<32x4xf32, #tpu.memory_space<vmem>>, %arg1: memref<20x8xf32, #tpu.memory_space<vmem>>, %arg2: memref<1x8xf32, #tpu.memory_space<vmem>>, %arg3: memref<40x4xf32, #tpu.memory_space<vmem>>, %arg4: memref<1x4xf32, #tpu.memory_space<vmem>>, %arg5: memref<2xf32, #tpu.memory_space<smem>>, %arg6: memref<16x64xf32, #tpu.memory_space<vmem>>, %arg7: memref<16x1xf32, #tpu.memory_space<vmem>>, %arg8: memref<16x4xf32, #tpu.memory_space<vmem>>, %arg9: memref<32x20xf32, #tpu.memory_space<vmem>>, %arg10: memref<32x40xf32, #tpu.memory_space<vmem>>) attributes {dimension_semantics = [], scalar_prefetch = 0 : i64, scratch_operands = 2 : i64, tpu.core_type = #tpu.core_type<tc>} {
    %c0 = arith.constant 0 : index
    %c0_0 = arith.constant 0 : index
    %0 = vector.load %arg0[%c0, %c0_0] : memref<32x4xf32, #tpu.memory_space<vmem>>, vector<32x4xf32>
    %1 = tpu.iota {dimensions = array<i32: 0>} : vector<32x4xi32>
    %c15_i32 = arith.constant 15 : i32
    %2 = vector.broadcast %c15_i32 : i32 to vector<32x4xi32>
    %3 = arith.andi %1, %2 : vector<32x4xi32>
    %c1_i32 = arith.constant 1 : i32
    %4 = tpu.dynamic_rotate %0 by %c1_i32 dim 0 : vector<32x4xf32>, i32 -> vector<32x4xf32>
    %c2_i32 = arith.constant 2 : i32
    %5 = tpu.dynamic_rotate %0 by %c2_i32 dim 0 : vector<32x4xf32>, i32 -> vector<32x4xf32>
    %c0_i32 = arith.constant 0 : i32
    %6 = vector.broadcast %c0_i32 : i32 to vector<32x4xi32>
    %7 = arith.cmpi eq, %3, %6 : vector<32x4xi32>
    %c1_i32_1 = arith.constant 1 : i32
    %8 = vector.broadcast %c1_i32_1 : i32 to vector<32x4xi32>
    %9 = arith.cmpi eq, %3, %8 : vector<32x4xi32>
    %10 = arith.subf %0, %4 : vector<32x4xf32>
    %cst = arith.constant 2.000000e+00 : f32
    %11 = vector.broadcast %cst : f32 to vector<32x4xf32>
    %12 = arith.mulf %11, %4 : vector<32x4xf32>
    %13 = arith.subf %0, %12 : vector<32x4xf32>
    %14 = arith.addf %13, %5 : vector<32x4xf32>
    %15 = arith.select %9, %10, %14 : vector<32x4xi1>, vector<32x4xf32>
    %cst_2 = arith.constant 0.000000e+00 : f32
    %16 = vector.broadcast %cst_2 : f32 to vector<32x4xf32>
    %17 = arith.select %7, %16, %15 : vector<32x4xi1>, vector<32x4xf32>
    %18 = tpu.iota {dimensions = array<i32: 0>} : vector<32x4xi32>
    %c15_i32_3 = arith.constant 15 : i32
    %19 = vector.broadcast %c15_i32_3 : i32 to vector<32x4xi32>
    %20 = arith.andi %18, %19 : vector<32x4xi32>
    %c2_i32_4 = arith.constant 2 : i32
    %21 = tpu.dynamic_rotate %17 by %c2_i32_4 dim 0 : vector<32x4xf32>, i32 -> vector<32x4xf32>
    %c2_i32_5 = arith.constant 2 : i32
    %22 = vector.broadcast %c2_i32_5 : i32 to vector<32x4xi32>
    %23 = arith.cmpi sge, %20, %22 : vector<32x4xi32>
    %cst_6 = arith.constant 0.000000e+00 : f32
    %24 = vector.broadcast %cst_6 : f32 to vector<32x4xf32>
    %25 = arith.select %23, %21, %24 : vector<32x4xi1>, vector<32x4xf32>
    %c0_7 = arith.constant 0 : index
    %c0_8 = arith.constant 0 : index
    %26 = vector.load %arg9[%c0_7, %c0_8] : memref<32x20xf32, #tpu.memory_space<vmem>>, vector<32x4xf32>
    tpu.vector_store %arg9[%c0_7, %c0_8], %25 {strides = array<i32>} : memref<32x20xf32, #tpu.memory_space<vmem>>, vector<32x4xf32>,
    %c1_i32_9 = arith.constant 1 : i32
    %27 = tpu.dynamic_rotate %17 by %c1_i32_9 dim 0 : vector<32x4xf32>, i32 -> vector<32x4xf32>
    %c1_i32_10 = arith.constant 1 : i32
    %28 = vector.broadcast %c1_i32_10 : i32 to vector<32x4xi32>
    %29 = arith.cmpi sge, %20, %28 : vector<32x4xi32>
    %cst_11 = arith.constant 0.000000e+00 : f32
    %30 = vector.broadcast %cst_11 : f32 to vector<32x4xf32>
    %31 = arith.select %29, %27, %30 : vector<32x4xi1>, vector<32x4xf32>
    %c0_12 = arith.constant 0 : index
    %c4 = arith.constant 4 : index
    %32 = vector.load %arg9[%c0_12, %c4] : memref<32x20xf32, #tpu.memory_space<vmem>>, vector<32x4xf32>
    tpu.vector_store %arg9[%c0_12, %c4], %31 {strides = array<i32>} : memref<32x20xf32, #tpu.memory_space<vmem>>, vector<32x4xf32>,
    %c0_13 = arith.constant 0 : index
    %c8 = arith.constant 8 : index
    %33 = vector.load %arg9[%c0_13, %c8] : memref<32x20xf32, #tpu.memory_space<vmem>>, vector<32x4xf32>
    tpu.vector_store %arg9[%c0_13, %c8], %17 {strides = array<i32>} : memref<32x20xf32, #tpu.memory_space<vmem>>, vector<32x4xf32>,
    %c31_i32 = arith.constant 31 : i32
    %34 = tpu.dynamic_rotate %17 by %c31_i32 dim 0 : vector<32x4xf32>, i32 -> vector<32x4xf32>
    %c15_i32_14 = arith.constant 15 : i32
    %35 = vector.broadcast %c15_i32_14 : i32 to vector<32x4xi32>
    %36 = arith.cmpi slt, %20, %35 : vector<32x4xi32>
    %cst_15 = arith.constant 0.000000e+00 : f32
    %37 = vector.broadcast %cst_15 : f32 to vector<32x4xf32>
    %38 = arith.select %36, %34, %37 : vector<32x4xi1>, vector<32x4xf32>
    %c0_16 = arith.constant 0 : index
    %c12 = arith.constant 12 : index
    %39 = vector.load %arg9[%c0_16, %c12] : memref<32x20xf32, #tpu.memory_space<vmem>>, vector<32x4xf32>
    tpu.vector_store %arg9[%c0_16, %c12], %38 {strides = array<i32>} : memref<32x20xf32, #tpu.memory_space<vmem>>, vector<32x4xf32>,
    %c30_i32 = arith.constant 30 : i32
    %40 = tpu.dynamic_rotate %17 by %c30_i32 dim 0 : vector<32x4xf32>, i32 -> vector<32x4xf32>
    %c14_i32 = arith.constant 14 : i32
    %41 = vector.broadcast %c14_i32 : i32 to vector<32x4xi32>
    %42 = arith.cmpi slt, %20, %41 : vector<32x4xi32>
    %cst_17 = arith.constant 0.000000e+00 : f32
    %43 = vector.broadcast %cst_17 : f32 to vector<32x4xf32>
    %44 = arith.select %42, %40, %43 : vector<32x4xi1>, vector<32x4xf32>
    %c0_18 = arith.constant 0 : index
    %c16 = arith.constant 16 : index
    %45 = vector.load %arg9[%c0_18, %c16] : memref<32x20xf32, #tpu.memory_space<vmem>>, vector<32x4xf32>
    tpu.vector_store %arg9[%c0_18, %c16], %44 {strides = array<i32>} : memref<32x20xf32, #tpu.memory_space<vmem>>, vector<32x4xf32>,
    %c0_19 = arith.constant 0 : index
    %c0_20 = arith.constant 0 : index
    %46 = vector.load %arg9[%c0_19, %c0_20] : memref<32x20xf32, #tpu.memory_space<vmem>>, vector<32x20xf32>
    %c0_21 = arith.constant 0 : index
    %c0_22 = arith.constant 0 : index
    %47 = vector.load %arg1[%c0_21, %c0_22] : memref<20x8xf32, #tpu.memory_space<vmem>>, vector<20x8xf32>
    %cst_23 = arith.constant dense<0.000000e+00> : vector<32x8xf32>
    %48 = tpu.matmul %46, %47, %cst_23 {dimension_numbers = #tpu.dot_dimension_numbers<[1], [0], [0], [1], [0, 0, 1, 1], [], []>} : vector<32x20xf32>, vector<20x8xf32>, vector<32x8xf32> -> vector<32x8xf32>
    %c0_24 = arith.constant 0 : index
    %c0_25 = arith.constant 0 : index
    %49 = vector.load %arg2[%c0_24, %c0_25] : memref<1x8xf32, #tpu.memory_space<vmem>>, vector<1x8xf32>
    %50 = vector.broadcast %49 : vector<1x8xf32> to vector<32x8xf32>
    %51 = arith.addf %48, %50 : vector<32x8xf32>
    %cst_26 = arith.constant 5.000000e-01 : f32
    %52 = vector.broadcast %cst_26 : f32 to vector<32x8xf32>
    %53 = arith.mulf %52, %51 : vector<32x8xf32>
    %cst_27 = arith.constant 0.707106769 : f32
    %54 = vector.broadcast %cst_27 : f32 to vector<32x8xf32>
    %55 = arith.mulf %51, %54 : vector<32x8xf32>
    %cst_28 = arith.constant 0.000000e+00 : f32
    %56 = vector.broadcast %cst_28 : f32 to vector<32x8xf32>
    %57 = arith.cmpf oge, %55, %56 : vector<32x8xf32>
    %cst_29 = arith.constant 0.000000e+00 : f32
    %58 = vector.broadcast %cst_29 : f32 to vector<32x8xf32>
    %59 = arith.subf %58, %55 : vector<32x8xf32>
    %60 = arith.select %57, %55, %59 : vector<32x8xi1>, vector<32x8xf32>
    %cst_30 = arith.constant 0.327591091 : f32
    %61 = vector.broadcast %cst_30 : f32 to vector<32x8xf32>
    %62 = arith.mulf %61, %60 : vector<32x8xf32>
    %cst_31 = arith.constant 1.000000e+00 : f32
    %63 = vector.broadcast %cst_31 : f32 to vector<32x8xf32>
    %64 = arith.addf %63, %62 : vector<32x8xf32>
    %cst_32 = arith.constant 1.000000e+00 : f32
    %65 = vector.broadcast %cst_32 : f32 to vector<32x8xf32>
    %66 = arith.divf %65, %64 : vector<32x8xf32>
    %cst_33 = arith.constant 1.06140542 : f32
    %67 = vector.broadcast %cst_33 : f32 to vector<32x8xf32>
    %68 = arith.mulf %66, %67 : vector<32x8xf32>
    %cst_34 = arith.constant -1.45315206 : f32
    %69 = vector.broadcast %cst_34 : f32 to vector<32x8xf32>
    %70 = arith.addf %69, %68 : vector<32x8xf32>
    %71 = arith.mulf %66, %70 : vector<32x8xf32>
    %cst_35 = arith.constant 1.42141378 : f32
    %72 = vector.broadcast %cst_35 : f32 to vector<32x8xf32>
    %73 = arith.addf %72, %71 : vector<32x8xf32>
    %74 = arith.mulf %66, %73 : vector<32x8xf32>
    %cst_36 = arith.constant -0.284496725 : f32
    %75 = vector.broadcast %cst_36 : f32 to vector<32x8xf32>
    %76 = arith.addf %75, %74 : vector<32x8xf32>
    %77 = arith.mulf %66, %76 : vector<32x8xf32>
    %cst_37 = arith.constant 0.254829586 : f32
    %78 = vector.broadcast %cst_37 : f32 to vector<32x8xf32>
    %79 = arith.addf %78, %77 : vector<32x8xf32>
    %80 = arith.mulf %66, %79 : vector<32x8xf32>
    %cst_38 = arith.constant 0.000000e+00 : f32
    %81 = vector.broadcast %cst_38 : f32 to vector<32x8xf32>
    %82 = arith.subf %81, %60 : vector<32x8xf32>
    %83 = arith.mulf %82, %60 : vector<32x8xf32>
    %84 = math.exp %83 : vector<32x8xf32>
    %85 = arith.mulf %80, %84 : vector<32x8xf32>
    %cst_39 = arith.constant 1.000000e+00 : f32
    %86 = vector.broadcast %cst_39 : f32 to vector<32x8xf32>
    %87 = arith.subf %86, %85 : vector<32x8xf32>
    %cst_40 = arith.constant 0.000000e+00 : f32
    %88 = vector.broadcast %cst_40 : f32 to vector<32x8xf32>
    %89 = arith.cmpf oge, %55, %88 : vector<32x8xf32>
    %cst_41 = arith.constant 0.000000e+00 : f32
    %90 = vector.broadcast %cst_41 : f32 to vector<32x8xf32>
    %91 = arith.subf %90, %87 : vector<32x8xf32>
    %92 = arith.select %89, %87, %91 : vector<32x8xi1>, vector<32x8xf32>
    %cst_42 = arith.constant 1.000000e+00 : f32
    %93 = vector.broadcast %cst_42 : f32 to vector<32x8xf32>
    %94 = arith.addf %93, %92 : vector<32x8xf32>
    %95 = arith.mulf %53, %94 : vector<32x8xf32>
    %96 = tpu.iota {dimensions = array<i32: 0>} : vector<32x8xi32>
    %c15_i32_43 = arith.constant 15 : i32
    %97 = vector.broadcast %c15_i32_43 : i32 to vector<32x8xi32>
    %98 = arith.andi %96, %97 : vector<32x8xi32>
    %c2_i32_44 = arith.constant 2 : i32
    %99 = tpu.dynamic_rotate %95 by %c2_i32_44 dim 0 : vector<32x8xf32>, i32 -> vector<32x8xf32>
    %c2_i32_45 = arith.constant 2 : i32
    %100 = vector.broadcast %c2_i32_45 : i32 to vector<32x8xi32>
    %101 = arith.cmpi sge, %98, %100 : vector<32x8xi32>
    %cst_46 = arith.constant 0.000000e+00 : f32
    %102 = vector.broadcast %cst_46 : f32 to vector<32x8xf32>
    %103 = arith.select %101, %99, %102 : vector<32x8xi1>, vector<32x8xf32>
    %c0_47 = arith.constant 0 : index
    %c0_48 = arith.constant 0 : index
    %104 = vector.load %arg10[%c0_47, %c0_48] : memref<32x40xf32, #tpu.memory_space<vmem>>, vector<32x8xf32>
    tpu.vector_store %arg10[%c0_47, %c0_48], %103 {strides = array<i32>} : memref<32x40xf32, #tpu.memory_space<vmem>>, vector<32x8xf32>,
    %c1_i32_49 = arith.constant 1 : i32
    %105 = tpu.dynamic_rotate %95 by %c1_i32_49 dim 0 : vector<32x8xf32>, i32 -> vector<32x8xf32>
    %c1_i32_50 = arith.constant 1 : i32
    %106 = vector.broadcast %c1_i32_50 : i32 to vector<32x8xi32>
    %107 = arith.cmpi sge, %98, %106 : vector<32x8xi32>
    %cst_51 = arith.constant 0.000000e+00 : f32
    %108 = vector.broadcast %cst_51 : f32 to vector<32x8xf32>
    %109 = arith.select %107, %105, %108 : vector<32x8xi1>, vector<32x8xf32>
    %c0_52 = arith.constant 0 : index
    %c8_53 = arith.constant 8 : index
    %110 = vector.load %arg10[%c0_52, %c8_53] : memref<32x40xf32, #tpu.memory_space<vmem>>, vector<32x8xf32>
    tpu.vector_store %arg10[%c0_52, %c8_53], %109 {strides = array<i32>} : memref<32x40xf32, #tpu.memory_space<vmem>>, vector<32x8xf32>,
    %c0_54 = arith.constant 0 : index
    %c16_55 = arith.constant 16 : index
    %111 = vector.load %arg10[%c0_54, %c16_55] : memref<32x40xf32, #tpu.memory_space<vmem>>, vector<32x8xf32>
    tpu.vector_store %arg10[%c0_54, %c16_55], %95 {strides = array<i32>} : memref<32x40xf32, #tpu.memory_space<vmem>>, vector<32x8xf32>,
    %c31_i32_56 = arith.constant 31 : i32
    %112 = tpu.dynamic_rotate %95 by %c31_i32_56 dim 0 : vector<32x8xf32>, i32 -> vector<32x8xf32>
    %c15_i32_57 = arith.constant 15 : i32
    %113 = vector.broadcast %c15_i32_57 : i32 to vector<32x8xi32>
    %114 = arith.cmpi slt, %98, %113 : vector<32x8xi32>
    %cst_58 = arith.constant 0.000000e+00 : f32
    %115 = vector.broadcast %cst_58 : f32 to vector<32x8xf32>
    %116 = arith.select %114, %112, %115 : vector<32x8xi1>, vector<32x8xf32>
    %c0_59 = arith.constant 0 : index
    %c24 = arith.constant 24 : index
    %117 = vector.load %arg10[%c0_59, %c24] : memref<32x40xf32, #tpu.memory_space<vmem>>, vector<32x8xf32>
    tpu.vector_store %arg10[%c0_59, %c24], %116 {strides = array<i32>} : memref<32x40xf32, #tpu.memory_space<vmem>>, vector<32x8xf32>,
    %c30_i32_60 = arith.constant 30 : i32
    %118 = tpu.dynamic_rotate %95 by %c30_i32_60 dim 0 : vector<32x8xf32>, i32 -> vector<32x8xf32>
    %c14_i32_61 = arith.constant 14 : i32
    %119 = vector.broadcast %c14_i32_61 : i32 to vector<32x8xi32>
    %120 = arith.cmpi slt, %98, %119 : vector<32x8xi32>
    %cst_62 = arith.constant 0.000000e+00 : f32
    %121 = vector.broadcast %cst_62 : f32 to vector<32x8xf32>
    %122 = arith.select %120, %118, %121 : vector<32x8xi1>, vector<32x8xf32>
    %c0_63 = arith.constant 0 : index
    %c32 = arith.constant 32 : index
    %123 = vector.load %arg10[%c0_63, %c32] : memref<32x40xf32, #tpu.memory_space<vmem>>, vector<32x8xf32>
    tpu.vector_store %arg10[%c0_63, %c32], %122 {strides = array<i32>} : memref<32x40xf32, #tpu.memory_space<vmem>>, vector<32x8xf32>,
    %c0_64 = arith.constant 0 : index
    %c0_65 = arith.constant 0 : index
    %124 = vector.load %arg10[%c0_64, %c0_65] : memref<32x40xf32, #tpu.memory_space<vmem>>, vector<32x40xf32>
    %c0_66 = arith.constant 0 : index
    %c0_67 = arith.constant 0 : index
    %125 = vector.load %arg3[%c0_66, %c0_67] : memref<40x4xf32, #tpu.memory_space<vmem>>, vector<40x4xf32>
    %cst_68 = arith.constant dense<0.000000e+00> : vector<32x4xf32>
    %126 = tpu.matmul %124, %125, %cst_68 {dimension_numbers = #tpu.dot_dimension_numbers<[1], [0], [0], [1], [0, 0, 1, 1], [], []>} : vector<32x40xf32>, vector<40x4xf32>, vector<32x4xf32> -> vector<32x4xf32>
    %c0_69 = arith.constant 0 : index
    %c0_70 = arith.constant 0 : index
    %127 = vector.load %arg4[%c0_69, %c0_70] : memref<1x4xf32, #tpu.memory_space<vmem>>, vector<1x4xf32>
    %128 = vector.broadcast %127 : vector<1x4xf32> to vector<32x4xf32>
    %129 = arith.addf %126, %128 : vector<32x4xf32>
    %c0_71 = arith.constant 0 : index
    %130 = memref.load %arg5[%c0_71] : memref<2xf32, #tpu.memory_space<smem>>
    %131 = vector.broadcast %130 : f32 to vector<32x4xf32>
    %c16_i32 = arith.constant 16 : i32
    %132 = vector.broadcast %c16_i32 : i32 to vector<32x4xi32>
    %133 = arith.cmpi sge, %1, %132 : vector<32x4xi32>
    %c1 = arith.constant 1 : index
    %134 = memref.load %arg5[%c1] : memref<2xf32, #tpu.memory_space<smem>>
    %135 = vector.broadcast %134 : f32 to vector<32x4xf32>
    %136 = arith.select %133, %135, %131 : vector<32x4xi1>, vector<32x4xf32>
    %137 = arith.mulf %129, %136 : vector<32x4xf32>
    %138 = tpu.concatenate %0, %137 in 0 : vector<32x4xf32>, vector<32x4xf32> -> vector<64x4xf32>
    %c0_72 = arith.constant 0 : index
    %c0_73 = arith.constant 0 : index
    %139 = vector.load %arg6[%c0_72, %c0_73] : memref<16x64xf32, #tpu.memory_space<vmem>>, vector<16x64xf32>
    %cst_74 = arith.constant dense<0.000000e+00> : vector<16x4xf32>
    %140 = tpu.matmul %139, %138, %cst_74 {dimension_numbers = #tpu.dot_dimension_numbers<[1], [0], [0], [1], [0, 0, 1, 1], [], []>} : vector<16x64xf32>, vector<64x4xf32>, vector<16x4xf32> -> vector<16x4xf32>
    %c0_75 = arith.constant 0 : index
    %c0_76 = arith.constant 0 : index
    %141 = vector.load %arg7[%c0_75, %c0_76] : memref<16x1xf32, #tpu.memory_space<vmem>>, vector<16x1xf32>
    %142 = vector.broadcast %141 : vector<16x1xf32> to vector<16x4xf32>
    %143 = arith.addf %140, %142 : vector<16x4xf32>
    %c0_77 = arith.constant 0 : index
    %c0_78 = arith.constant 0 : index
    %144 = vector.load %arg8[%c0_77, %c0_78] : memref<16x4xf32, #tpu.memory_space<vmem>>, vector<16x4xf32>
    tpu.vector_store %arg8[%c0_77, %c0_78], %143 {strides = array<i32>} : memref<16x4xf32, #tpu.memory_space<vmem>>, vector<16x4xf32>,
    return
  }
}

</mosaic_0001>

<bundles_post_ra>
// kernel: tpu_custom_call.1
= control target key start
LH: loop header
LB: loop body
LE: loop exit
PB: predicated region body
PF: predicated region fallthrough
CT: control target
= control target key end

     0   :  { %13 = vsyncpa [#allocation5], 0  ;;  %s1488_s0 = inlined_call_operand.vmem [shape: f32[32,4], index: 0, kind: input, shape index: {}]   ;;  %s1489_s1 = inlined_call_operand.vmem [shape: f32[20,8], index: 1, kind: input, shape index: {}]   ;;  %s1490_s2 = inlined_call_operand.vmem [shape: f32[1,8], index: 2, kind: input, shape index: {}]   ;;  %s1491_s3 = inlined_call_operand.vmem [shape: f32[40,4], index: 3, kind: input, shape index: {}]   ;;  %s1492_s4 = inlined_call_operand.vmem [shape: f32[1,4], index: 4, kind: input, shape index: {}]   ;;  %s1493_s5 = inlined_call_operand.vmem [shape: f32[2], index: 5, kind: input, shape index: {}]   ;;  %s1494_s6 = inlined_call_operand.vmem [shape: f32[16,64], index: 6, kind: input, shape index: {}]   ;;  %s1495_s7 = inlined_call_operand.vmem [shape: f32[16,1], index: 7, kind: input, shape index: {}]   ;;  %s1496_s8 = inlined_call_operand.vmem [shape: f32[16,4], index: 8, kind: output, shape index: {}]  }
   0x1   :  { %s30_s29 = sshll.u32 %s1493_s5, 4  ;;  %s31_s29 = int_to_ptr.vmem [resolvable:$true] %s30_s29 }
   0x2   :  { %s999_s30 = scalar_lea.vmem %s31_s29, 16  ;;  %p1004_p1 = scmp.lt.s32.totalorder %s31_s29, %s31_s29 }
   0x3   :  { %p1000_p0 = scmp.ne.s32.totalorder %s31_s29, %s999_s30  ;;  %p1005_p2 = scmp.lt.s32.totalorder %s999_s30, %s999_s30 }
   0x5   :  { %p1006_p3 = por %p1005_p2, %p1004_p1 }
   0x7   :  { %p1007_p4 = pnand %p1006_p3, %p1000_p0 }
   0x9   :  { %1010 = shalt.err (!%p1007_p4)
}
   0xa   :  { %s1013_s9 = smov [#allocation4]  }
   0xb   :  { %33 = dma.vmem_to_smem %s31_s29, 16, %s1013_s9, [#allocation5]  }
   0xc   :  { %1011 = dma.done.wait [#allocation5], 16  }
   0xd   :  { %1012 = vsyncadd [#allocation5], 4294967280 }
   0xe   :  { %41 = sfence }
   0xf   :  { %v1072_v0 = vld [vmem:[%s1488_s0] sm:$0xff]  ;;  %v1077_v1 = vld [vmem:[%s1488_s0 + $0x8] sm:$0xff]  ;;  %v1082_v2 = vld [vmem:[%s1488_s0 + $0x18] sm:$0xff]  ;;  %v46_v3 = vlaneseq  ;;  %s1015_s17 = smov 4   ;;  %s1016_s18 = smov 12   ;;  %vm1497_vm12 = vcmask 31744  }
  0x10   :  { %v55_v4 = vrot.slane %v1072_v0, 7  ;;  %v56_v5 = vrot.slane %v1077_v1, 7  ;;  %v58_v6 = vrot.slane %v1082_v2, 7  ;;  %v1092_v8 = vld [vmem:[%s1488_s0 + $0x10] sm:$0xff]  ;;  %v64_v9 = vrot.slane %v1072_v0, 6  ;;  %s1014_s0 = smov 8  }
  0x11   :  { %v1087_v7 = vshrl.u32 %v46_v3, 7  ;;  %v67_v10 = vrot.slane %v1082_v2, 6  ;;  %v65_v11 = vrot.slane %v1077_v1, 6  ;;  %v57_v12 = vrot.slane %v1092_v8, 7  ;;  %s1017_s23 = smov 16   ;;  %s1019_s9 = smov 32  }
  0x12   :  { %v66_v17 = vrot.slane %v1092_v8, 6  ;;  %vm287_vm15 = vcmask 1043456   ;;  %s739_s19 = sld [smem:[#allocation4]]  ;;  %s869_s22 = sld [smem:[#allocation4 + $0x1]] }
  0x13   :  { %vm59_vm0 = vcmp.lt.s32.totalorder %v1087_v7, 1  ;;  %vm68_vm1 = vcmp.lt.s32.totalorder %v1087_v7, 2  ;;  %v1101_v13 = vand.u32 15, %v1087_v7  ;;  %v49_v20 = vadd.s32 16, %v1087_v7 }
  0x14   :  { %v62_v14 = vsel %vm59_vm0, %v55_v4, %v56_v5  ;;  %v63_v15 = vsel %vm59_vm0, %v58_v6, %v55_v4  ;;  %v72_v18 = vsel %vm68_vm1, %v67_v10, %v64_v9  ;;  %v60_v21 = vsel %vm59_vm0, %v57_v12, %v58_v6  ;;  %v264_v4 = vld [vmem:[%s1489_s1] sm:$0xff] }
  0x15   :  { %v85_v16 = vmul.f32 2.0, %v63_v15  ;;  %v86_v19 = vmul.f32 2.0, %v62_v14  ;;  %v71_v22 = vsel %vm68_vm1, %v64_v9, %v65_v11  ;;  %v81_v23 = vsub.f32 %v1072_v0, %v63_v15 }
  0x16   :  { %v61_v25 = vsel %vm59_vm0, %v56_v5, %v57_v12  ;;  %vm77_vm2 = vcmp.eq.s32.totalorder %v1101_v13, 1  ;;  %v1121_v27 = vand.u32 15, %v49_v20  ;;  %vm73_vm3 = vcmp.eq.s32.totalorder %v1101_v13, 0  ;;  %v265_v5 = vld [vmem:[%s1489_s1 + $0x8] sm:$0xff] }
  0x17   :  { %v89_v24 = vsub.f32 %v1072_v0, %v85_v16  ;;  %v90_v26 = vsub.f32 %v1077_v1, %v86_v19  ;;  %v87_v28 = vmul.f32 2.0, %v61_v25  ;;  %v88_v30 = vmul.f32 2.0, %v60_v21 }
  0x18   :  { %v70_v32 = vsel %vm68_vm1, %v65_v11, %v66_v17  ;;  %v48_v34 = vadd.s32 8, %v1087_v7  ;;  %v69_v36 = vsel %vm68_vm1, %v66_v17, %v67_v10  ;;  %v83_v37 = vsub.f32 %v1092_v8, %v61_v25 }
  0x19   :  { %v93_v29 = vadd.f32 %v89_v24, %v72_v18  ;;  %v1124_v31 = vadd.f32 %v90_v26, %v71_v22  ;;  %v91_v33 = vsub.f32 %v1092_v8, %v87_v28  ;;  %v92_v38 = vsub.f32 %v1082_v2, %v88_v30  ;;  %v266_v26 = vld [vmem:[%s1489_s1 + $0x10] sm:$0xf] }
  0x1a   :  { %vm75_vm4 = vcmp.eq.s32.totalorder %v1121_v27, 0  ;;  %vm79_vm5 = vcmp.eq.s32.totalorder %v1121_v27, 1  ;;  %vm188_vm6 = vcmp.lt.s32.totalorder %v1087_v7, 7  ;;  %v52_v46 = vand.u32 15, %v48_v34 }
  0x1b   :  { %v97_v35 = vsel %vm77_vm2, %v81_v23, %v93_v29  ;;  %v127_v40 = vrot.slane %v1124_v31, 7  ;;  %169 = vrot.lane.b32.xlu1 %v1124_v31, %s1014_s0  ;;  %v185_v43 = vrot.slane %v1124_v31, 1  ;;  %v95_v44 = vadd.f32 %v91_v33, %v70_v32 }
  0x1c   :  { %v1134_v39 = vsel %vm73_vm3, 0.0, %v97_v35  ;;  %v1145_v45 = vadd.f32 %v92_v38, %v69_v36  ;;  %v223_v49 = vrot.slane %v1124_v31, 2  ;;  %vm226_vm7 = vcmp.lt.s32.totalorder %v1087_v7, 6 }
  0x1d   :  { %v126_v41 = vrot.slane %v1134_v39, 7  ;;  %v184_v42 = vrot.slane %v1134_v39, 1  ;;  %v99_v48 = vsel %vm79_vm5, %v83_v37, %v95_v44  ;;  %v222_v53 = vrot.slane %v1134_v39, 2 }
  0x1e   :  { %v1153_v50 = vsel %vm75_vm4, 0.0, %v99_v48  ;;  %v129_v51 = vrot.slane %v1145_v45, 7  ;;  %vm1164_vm8 = vcmp.lt.s32.totalorder %v52_v46, 15  ;;  %v50_v59 = vadd.s32 24, %v1087_v7 }
  0x1f   :  { %v132_v47 = vsel %vm59_vm0, %v126_v41, %v127_v40  ;;  %167 = vrot.lane.b32.xlu1 %v1134_v39, %s1014_s0  ;;  %v191_v52 = vsel %vm188_vm6, %v184_v42, %v185_v43  ;;  %v128_v54 = vrot.slane %v1153_v50, 7  ;;  %v186_v55 = vrot.slane %v1153_v50, 1 }
  0x20   :  { %148 = vrot.lane.b32.xlu0 %v132_v47, %s1015_s17  ;;  %vm134_vm9 = vcmp.ge.s32.totalorder %v1101_v13, 1  ;;  %vm1178_vm10 = vcmp.lt.s32.totalorder %v52_v46, 14  ;;  %vm1498_vm11 = vcmp.ge.s32.totalorder %v1121_v27, 1  ;;  %v229_v61 = vsel %vm226_vm7, %v222_v53, %v223_v49 }
  0x21   :  { %v130_v57 = vsel %vm59_vm0, %v128_v54, %v129_v51  ;;  %v190_v58 = vsel %vm188_vm6, %v185_v43, %v186_v55  ;;  %v133_v62 = vsel %vm59_vm0, %v129_v51, %v126_v41  ;;  %v187_v3 = vrot.slane %v1145_v45, 1 }
  0x22   :  { %v198_v63 = vsel %vm1164_vm8, %v190_v58, 0.0  ;;  %v224_v6 = vrot.slane %v1153_v50, 2  ;;  %v131_v9 = vsel %vm59_vm0, %v127_v40, %v128_v54  ;;  %v105_v10 = vrot.slane %v1134_v39, 6 }
  0x23   :  { %152 = vrot.lane.b32.xlu1 %v130_v57, %s1015_s17  ;;  %v106_v11 = vrot.slane %v1124_v31, 6  ;;  %v54_v12 = vand.u32 15, %v50_v59  ;;  %v107_v14 = vrot.slane %v1153_v50, 6  ;;  %v108_v15 = vrot.slane %v1145_v45, 6  ;;  %v858_v59 = vld [vmem:[%s1490_s2] ss:$0 sm:$0xff] }
  0x24   :  { %205 = vrot.lane.b32.xlu0 %v191_v52, %s1016_s18  ;;  %vm113_vm13 = vcmp.ge.s32.totalorder %v1101_v13, 2  ;;  %v138_v16 = vsel %vm134_vm9, %v133_v62, 0.0  ;;  %vm115_vm14 = vcmp.ge.s32.totalorder %v1121_v27, 2  ;;  %v945_v18 = vpack.c.bf16 %v265_v5, %v264_v4  ;;  %s1018_s2 = smov 24  }
  0x25   :  { %v111_v17 = vsel %vm68_vm1, %v105_v10, %v106_v11  ;;  %v140_v19 = vsel %vm1498_vm11, %v131_v9, 0.0  ;;  %v109_v20 = vsel %vm68_vm1, %v107_v14, %v108_v15  ;;  %v112_v21 = vsel %vm68_vm1, %v108_v15, %v105_v10 }
  0x26   :  { %123 = vst.msk [vmem:[#allocation2 + $0x8] sm:$0xff] %vm1497_vm12, %v111_v17  ;;  %v110_v22 = vsel %vm68_vm1, %v106_v11, %v107_v14  ;;  %v228_v23 = vsel %vm226_vm7, %v223_v49, %v224_v6  ;;  %125 = vst.msk [vmem:[#allocation2 + $0x18] sm:$0xff] %vm1497_vm12, %v109_v20  ;;  %v117_v24 = vsel %vm113_vm13, %v112_v21, 0.0  ;;  %946 = vmatprep.subr.bf16.mxu1 %v945_v18  ;;  %vm1242_vm2 = vcmp.lt.s32.totalorder %v54_v12, 15 }
  0x27   :  { %207 = vrot.lane.b32.xlu1 %v198_v63, %s1016_s18  ;;  %v119_v25 = vsel %vm115_vm14, %v110_v22, 0.0  ;;  %122 = vst.msk [vmem:[#allocation2] sm:$0xff] %vm1497_vm12, %v117_v24  ;;  %948 = vmatpush3.bf16.msra.mxu1 %v945_v18  ;;  %v236_v28 = vsel %vm1178_vm10, %v228_v23, 0.0  ;;  %v192_v29 = vsel %vm188_vm6, %v187_v3, %v184_v42  ;;  %v225_v31 = vrot.slane %v1145_v45, 2 }
  0x28   :  { %243 = vrot.lane.b32.xlu0 %v229_v61, %s1017_s23  ;;  %124 = vst.msk [vmem:[#allocation2 + $0x10] sm:$0xff] %vm1497_vm12, %v119_v25  ;;  %902 = vmatprep.subr.msk.mxu1 %vm287_vm15, %v266_v26  ;;  %v200_v32 = vsel %vm1242_vm2, %v192_v29, 0.0  ;;  %vm1256_vm3 = vcmp.lt.s32.totalorder %v54_v12, 14  ;;  %v189_v35 = vsel %vm188_vm6, %v186_v55, %v187_v3  ;;  %vm158_vm4 = vcmask 64544  }
  0x29   :  { %v230_v33 = vsel %vm226_vm7, %v225_v31, %v222_v53  ;;  %v227_v37 = vsel %vm226_vm7, %v224_v6, %v225_v31  ;;  %vm179_vm5 = vcmask 97344   ;;  %vm255_vm12 = vcmask 162944  }
  0x2a   :  { %v238_v36 = vsel %vm1256_vm3, %v230_v33, 0.0  ;;  %vm274_vm11 = vcmask 162816  }
  0x2b   :  { %150 = vrot.lane.b32.xlu1 %v140_v19, %s1015_s17  ;;  %903 = vmatpush3.msk.msra.mxu1 %vm287_vm15, %v266_v26  ;;  %vm217_vm15 = vcmask 130144  }
  0x2c   :  { %146 = vrot.lane.b32.xlu0 %v138_v16, %s1015_s17 }
  0x2f   :  { %173 = vrot.lane.b32.xlu1 %v1145_v45, %s1014_s0 }
  0x30   :  { %245 = vrot.lane.b32.xlu0 %v236_v28, %s1017_s23 }
  0x33   :  { %211 = vrot.lane.b32.xlu1 %v200_v32, %s1016_s18 }
  0x34   :  { %171 = vrot.lane.b32.xlu0 %v1153_v50, %s1014_s0 }
  0x37   :  { %249 = vrot.lane.b32.xlu1 %v238_v36, %s1017_s23 }
  0x38   :  { %209 = vrot.lane.b32.xlu0 %v189_v35, %s1016_s18 }
  0x3c   :  { %247 = vrot.lane.b32.xlu0 %v227_v37, %s1017_s23 }
  0x8d   :  { %v170_v38 = vpop.permute.xlu1 %169 }
  0x91   :  { %v168_v40 = vpop.permute.xlu1 %167 }
  0x92   :  { %v149_v39 = vpop.permute.xlu0 %148 }
  0x93   :  { %160 = vst.msk [vmem:[#allocation2 + $0x8] sm:$0xff] %vm158_vm4, %v149_v39 }
  0x94   :  { %181 = vst.msk [vmem:[#allocation2 + $0x8] sm:$0xff] %vm179_vm5, %v170_v38 }
  0x95   :  { %v153_v42 = vpop.permute.xlu1 %152 }
  0x96   :  { %v206_v41 = vpop.permute.xlu0 %205  ;;  %162 = vst.msk [vmem:[#allocation2 + $0x18] sm:$0xff] %vm158_vm4, %v153_v42 }
  0x99   :  { %v208_v44 = vpop.permute.xlu1 %207 }
  0x9a   :  { %v244_v43 = vpop.permute.xlu0 %243  ;;  %219 = vst.msk [vmem:[#allocation2 + $0x8] sm:$0xff] %vm217_vm15, %v208_v44 }
  0x9d   :  { %v151_v46 = vpop.permute.xlu1 %150 }
  0x9e   :  { %v147_v45 = vpop.permute.xlu0 %146  ;;  %161 = vst.msk [vmem:[#allocation2 + $0x10] sm:$0xff] %vm158_vm4, %v151_v46 }
  0x9f   :  { %159 = vst.msk [vmem:[#allocation2] sm:$0xff] %vm158_vm4, %v147_v45 }
  0xa0   :  { %180 = vst.msk [vmem:[#allocation2] sm:$0xff] %vm179_vm5, %v168_v40 }
  0xa1   :  { %218 = vst.msk [vmem:[#allocation2] sm:$0xff] %vm217_vm15, %v206_v41  ;;  %v174_v48 = vpop.permute.xlu1 %173 }
  0xa2   :  { %256 = vst.msk [vmem:[#allocation2] sm:$0xff] %vm255_vm12, %v244_v43  ;;  %v246_v47 = vpop.permute.xlu0 %245 }
  0xa3   :  { %257 = vst.msk [vmem:[#allocation2 + $0x8] sm:$0xff] %vm255_vm12, %v246_v47 }
  0xa4   :  { %183 = vst.msk [vmem:[#allocation2 + $0x18] sm:$0xff] %vm179_vm5, %v174_v48 }
  0xa5   :  { %v212_v50 = vpop.permute.xlu1 %211 }
  0xa6   :  { %v172_v49 = vpop.permute.xlu0 %171  ;;  %221 = vst.msk [vmem:[#allocation2 + $0x18] sm:$0xff] %vm217_vm15, %v212_v50 }
  0xa7   :  { %182 = vst.msk [vmem:[#allocation2 + $0x10] sm:$0xff] %vm179_vm5, %v172_v49 }
  0xa9   :  { %v260_v51 = vld [vmem:[#allocation2] sm:$0xff]  ;;  %v250_v54 = vpop.permute.xlu1 %249 }
  0xaa   :  { %904 = vmatprep.mubr.msk.f32.mxu1 %vm274_vm11, %v260_v51  ;;  %v210_v52 = vpop.permute.xlu0 %209  ;;  %v261_v53 = vld [vmem:[#allocation2 + $0x8] sm:$0xff]  ;;  %259 = vst.msk [vmem:[#allocation2 + $0x18] sm:$0xff] %vm255_vm12, %v250_v54 }
  0xab   :  { %220 = vst.msk [vmem:[#allocation2 + $0x10] sm:$0xff] %vm217_vm15, %v210_v52  ;;  %905 = vmatmul.mubr.msk.f32.vlgmr.msra.gmra.mrb[0].mxu1 %vm274_vm11, %v261_v53  ;;  %vm500_vm15 = vcmask 64512  }
  0xae   :  { %v248_v55 = vpop.permute.xlu0 %247 }
  0xaf   :  { %258 = vst.msk [vmem:[#allocation2 + $0x10] sm:$0xff] %vm255_vm12, %v248_v55 }
  0xb1   :  { %v263_v57 = vld [vmem:[#allocation2 + $0x18] sm:$0xff] }
  0xb6   :  { %v262_v58 = vld [vmem:[#allocation2 + $0x10] sm:$0xff] }
  0xb7   :  { %907 = vmatprep.mubr.msk.f32.mxu1 %vm274_vm11, %v262_v58 }
  0xb8   :  { %908 = vmatmul.mubr.msk.f32.gmra.mrb[2].mxu1 %vm274_vm11, %v263_v57 }
 0x17e   :  { %v906_v61 = vpop.f32.mrb[0].mxu1 }
 0x17f   :  { %v1293_v62 = vadd.f32 %v906_v61, %v858_v59  ;;  %v357_v63 = vpop.f32.mrb[1].mxu1 }
 0x180   :  { %v1295_v3 = vadd.f32 %v858_v59, %v357_v63 }
 0x181   :  { %v1298_v4 = vmul.f32 0.70710677, %v1293_v62 }
 0x182   :  { %v1301_v5 = vmul.f32 0.70710677, %v1295_v3 }
 0x183   :  { %vm385_vm12 = vcmp.ge.f32.partialorder %v1298_v4, 0.0  ;;  %v389_v6 = vsub.f32 0.0, %v1298_v4 }
 0x184   :  { %vm384_vm11 = vcmp.ge.f32.partialorder %v1301_v5, 0.0  ;;  %v388_v9 = vsub.f32 0.0, %v1301_v5 }
 0x185   :  { %v393_v10 = vsel %vm385_vm12, %v1298_v4, %v389_v6 }
 0x186   :  { %v397_v11 = vmul.f32 0.3275911, %v393_v10  ;;  %v392_v12 = vsel %vm384_vm11, %v1301_v5, %v388_v9  ;;  %v449_v23 = vsub.f32 0.0, %v393_v10 }
 0x187   :  { %v396_v14 = vmul.f32 0.3275911, %v392_v12  ;;  %v448_v25 = vsub.f32 0.0, %v392_v12 }
 0x188   :  { %v401_v15 = vadd.f32 1.0, %v397_v11  ;;  %v453_v33 = vmul.f32 %v449_v23, %v393_v10 }
 0x189   :  { %v400_v16 = vadd.f32 1.0, %v396_v14  ;;  %v452_v38 = vmul.f32 %v448_v25, %v392_v12 }
 0x18a   :  { %983 = vrcp.f32 %v401_v15  ;;  %v458_v43 = vmul.f32 1.442695, %v453_v33 }
 0x18b   :  { %985 = vrcp.f32 %v400_v16  ;;  %v909_v17 = vpop.f32.mrb[2].mxu1  ;;  %v456_v46 = vmul.f32 1.442695, %v452_v38 }
 0x18c   :  { %v1313_v18 = vadd.f32 %v909_v17, %v858_v59  ;;  %v367_v19 = vpop.f32.mrb[3].mxu1 }
 0x18d   :  { %v1315_v20 = vadd.f32 %v858_v59, %v367_v19 }
 0x18e   :  { %v1318_v21 = vmul.f32 0.70710677, %v1313_v18 }
 0x18f   :  { %v1321_v22 = vmul.f32 0.70710677, %v1315_v20 }
 0x190   :  { %vm387_vm4 = vcmp.ge.f32.partialorder %v1318_v21, 0.0  ;;  %v391_v24 = vsub.f32 0.0, %v1318_v21 }
 0x191   :  { %vm386_vm5 = vcmp.ge.f32.partialorder %v1321_v22, 0.0  ;;  %v390_v26 = vsub.f32 0.0, %v1321_v22 }
 0x192   :  { %v395_v28 = vsel %vm387_vm4, %v1318_v21, %v391_v24  ;;  %v378_v21 = vmul.f32 0.5, %v1315_v20 }
 0x193   :  { %v399_v29 = vmul.f32 0.3275911, %v395_v28  ;;  %v394_v31 = vsel %vm386_vm5, %v1321_v22, %v390_v26  ;;  %v451_v51 = vsub.f32 0.0, %v395_v28 }
 0x194   :  { %v984_v32 = vpop.eup %983  ;;  %v398_v35 = vmul.f32 0.3275911, %v394_v31  ;;  %v450_v53 = vsub.f32 0.0, %v394_v31 }
 0x195   :  { %v986_v36 = vpop.eup %985  ;;  %v413_v37 = vmul.f32 1.0614054, %v984_v32  ;;  %v403_v39 = vadd.f32 1.0, %v399_v29  ;;  %v455_v59 = vmul.f32 %v451_v51, %v395_v28 }
 0x196   :  { %v412_v40 = vmul.f32 1.0614054, %v986_v36  ;;  %v402_v41 = vadd.f32 1.0, %v398_v35  ;;  %v454_v9 = vmul.f32 %v450_v53, %v394_v31 }
 0x197   :  { %v417_v42 = vadd.f32 -1.4531521, %v413_v37  ;;  %987 = vrcp.f32 %v403_v39  ;;  %v462_v16 = vmul.f32 1.442695, %v455_v59 }
 0x198   :  { %v416_v44 = vadd.f32 -1.4531521, %v412_v40  ;;  %989 = vrcp.f32 %v402_v41  ;;  %v460_v25 = vmul.f32 1.442695, %v454_v9 }
 0x199   :  { %v421_v45 = vmul.f32 %v984_v32, %v417_v42  ;;  %991 = vpow2.f32 %v458_v43 }
 0x19a   :  { %v420_v47 = vmul.f32 %v986_v36, %v416_v44  ;;  %993 = vpow2.f32 %v456_v46  ;;  %v377_v44 = vmul.f32 0.5, %v1293_v62 }
 0x19b   :  { %v425_v48 = vadd.f32 1.4214138, %v421_v45  ;;  %995 = vpow2.f32 %v462_v16 }
 0x19c   :  { %v424_v49 = vadd.f32 1.4214138, %v420_v47  ;;  %997 = vpow2.f32 %v460_v25 }
 0x19d   :  { %v429_v50 = vmul.f32 %v984_v32, %v425_v48  ;;  %v376_v48 = vmul.f32 0.5, %v1295_v3 }
 0x19e   :  { %v428_v52 = vmul.f32 %v986_v36, %v424_v49 }
 0x19f   :  { %v433_v54 = vadd.f32 -0.28449672, %v429_v50 }
 0x1a0   :  { %v432_v55 = vadd.f32 -0.28449672, %v428_v52 }
 0x1a1   :  { %v988_v57 = vpop.eup %987  ;;  %v437_v58 = vmul.f32 %v984_v32, %v433_v54 }
 0x1a2   :  { %v990_v61 = vpop.eup %989  ;;  %v436_v63 = vmul.f32 %v986_v36, %v432_v55  ;;  %v415_v6 = vmul.f32 1.0614054, %v988_v57 }
 0x1a3   :  { %v441_v10 = vadd.f32 0.2548296, %v437_v58  ;;  %v414_v11 = vmul.f32 1.0614054, %v990_v61  ;;  %v992_v19 = vpop.eup %991 }
 0x1a4   :  { %v440_v12 = vadd.f32 0.2548296, %v436_v63  ;;  %v419_v14 = vadd.f32 -1.4531521, %v415_v6  ;;  %v994_v26 = vpop.eup %993 }
 0x1a5   :  { %v445_v15 = vmul.f32 %v984_v32, %v441_v10  ;;  %v418_v17 = vadd.f32 -1.4531521, %v414_v11  ;;  %v996_v58 = vpop.eup %995 }
 0x1a6   :  { %v444_v23 = vmul.f32 %v986_v36, %v440_v12  ;;  %v423_v24 = vmul.f32 %v988_v57, %v419_v14  ;;  %v998_v9 = vpop.eup %997 }
 0x1a7   :  { %v465_v29 = vmul.f32 %v992_v19, %v445_v15  ;;  %v422_v33 = vmul.f32 %v990_v61, %v418_v17 }
 0x1a8   :  { %v464_v35 = vmul.f32 %v994_v26, %v444_v23  ;;  %v427_v28 = vadd.f32 1.4214138, %v423_v24  ;;  %v629_v26 = vld [vmem:[%s1491_s3] sm:$0xff] }
 0x1a9   :  { %v469_v37 = vsub.f32 1.0, %v465_v29  ;;  %v426_v38 = vadd.f32 1.4214138, %v422_v33  ;;  %v630_v29 = vld [vmem:[%s1491_s3 + $0x8] sm:$0xff]  ;;  %v379_v33 = vmul.f32 0.5, %v1313_v18 }
 0x1aa   :  { %v468_v31 = vsub.f32 1.0, %v464_v35  ;;  %v431_v39 = vmul.f32 %v988_v57, %v427_v28 }
 0x1ab   :  { %v473_v40 = vsub.f32 0.0, %v469_v37  ;;  %v430_v41 = vmul.f32 %v990_v61, %v426_v38 }
 0x1ac   :  { %v472_v32 = vsub.f32 0.0, %v468_v31  ;;  %v435_v42 = vadd.f32 -0.28449672, %v431_v39 }
 0x1ad   :  { %v477_v36 = vsel %vm385_vm12, %v469_v37, %v473_v40  ;;  %v434_v43 = vadd.f32 -0.28449672, %v430_v41  ;;  %v949_v37 = vpack.c.bf16 %v630_v29, %v629_v26 }
 0x1ae   :  { %v481_v45 = vadd.f32 1.0, %v477_v36  ;;  %v476_v46 = vsel %vm384_vm11, %v468_v31, %v472_v32  ;;  %v439_v47 = vmul.f32 %v988_v57, %v435_v42 }
 0x1af   :  { %v480_v49 = vadd.f32 1.0, %v476_v46  ;;  %v438_v50 = vmul.f32 %v990_v61, %v434_v43  ;;  %950 = vmatprep.subr.bf16.mxu1 %v949_v37 }
 0x1b0   :  { %v1339_v51 = vmul.f32 %v481_v45, %v377_v44  ;;  %v443_v52 = vadd.f32 0.2548296, %v439_v47  ;;  %952 = vmatpush3.bf16.msra.mxu1 %v949_v37  ;;  %v758_v37 = vld [vmem:[%s1495_s7 + $0x8] sm:$0xff] }
 0x1b1   :  { %v484_v53 = vmul.f32 %v480_v49, %v376_v48  ;;  %v442_v54 = vadd.f32 0.2548296, %v438_v50  ;;  %v631_v50 = vld [vmem:[%s1491_s3 + $0x10] sm:$0xff] }
 0x1b2   :  { %v447_v55 = vmul.f32 %v988_v57, %v443_v52  ;;  %544 = vrot.lane.b32.xlu1 %v1339_v51, %s1017_s23  ;;  %v506_v62 = vrot.slane %v1339_v51, 7  ;;  %v560_v4 = vrot.slane %v1339_v51, 1  ;;  %v593_v5 = vrot.slane %v1339_v51, 2  ;;  %v632_v52 = vld [vmem:[%s1491_s3 + $0x18] sm:$0xff] }
 0x1b3   :  { %v446_v59 = vmul.f32 %v990_v61, %v442_v54  ;;  %542 = vrot.lane.b32.xlu0 %v484_v53, %s1017_s23  ;;  %v505_v3 = vrot.slane %v484_v53, 7  ;;  %v559_v63 = vrot.slane %v484_v53, 1  ;;  %v592_v6 = vrot.slane %v484_v53, 2 }
 0x1b4   :  { %v467_v10 = vmul.f32 %v996_v58, %v447_v55  ;;  %v489_v57 = vrot.slane %v1339_v51, 6  ;;  %v488_v11 = vrot.slane %v484_v53, 6 }
 0x1b5   :  { %v466_v12 = vmul.f32 %v998_v9, %v446_v59  ;;  %v511_v14 = vsel %vm59_vm0, %v505_v3, %v506_v62  ;;  %v565_v61 = vsel %vm188_vm6, %v559_v63, %v560_v4  ;;  %v598_v15 = vsel %vm226_vm7, %v592_v6, %v593_v5 }
 0x1b6   :  { %v471_v16 = vsub.f32 1.0, %v467_v10  ;;  %523 = vrot.lane.b32.xlu1 %v511_v14, %s1014_s0  ;;  %v494_v17 = vsel %vm68_vm1, %v488_v11, %v489_v57 }
 0x1b7   :  { %v470_v19 = vsub.f32 1.0, %v466_v12  ;;  %575 = vrot.lane.b32.xlu0 %v565_v61, %s1018_s2  ;;  %502 = vst.msk [vmem:[#allocation3 + $0x8] sm:$0xff] %vm500_vm15, %v494_v17 }
 0x1b8   :  { %v475_v23 = vsub.f32 0.0, %v471_v16 }
 0x1b9   :  { %v474_v24 = vsub.f32 0.0, %v470_v19 }
 0x1ba   :  { %v479_v25 = vsel %vm387_vm4, %v471_v16, %v475_v23 }
 0x1bb   :  { %v483_v35 = vadd.f32 1.0, %v479_v25  ;;  %v478_v28 = vsel %vm386_vm5, %v470_v19, %v474_v24  ;;  %608 = vrot.lane.b32.xlu0 %v598_v15, %s1019_s9 }
 0x1bc   :  { %v482_v38 = vadd.f32 1.0, %v478_v28  ;;  %v755_v28 = vld [vmem:[%s1494_s6] sm:$0xff] }
 0x1bd   :  { %v487_v31 = vmul.f32 %v483_v35, %v379_v33  ;;  %v957_v33 = vpack.c.bf16 %v1077_v1, %v1072_v0  ;;  %v961_v35 = vpack.c.bf16 %v1082_v2, %v1092_v8  ;;  %v757_v0 = vld [vmem:[%s1495_s7] sm:$0xff]  ;;  %v1020_v1 = vmov 0  }
 0x1be   :  { %v486_v39 = vmul.f32 %v482_v38, %v378_v21  ;;  %982 = vset.pattern.permute.xlu1 %v1020_v1  ;;  %981 = vset.pattern.permute.xlu0 %v1020_v1  ;;  %v864_v2 = vld [vmem:[%s1492_s4] ss:$0 sm:$0xff]  ;;  %v740_v21 = vstv %s739_s19 }
 0x1bf   :  { %548 = vrot.lane.b32.xlu1 %v487_v31, %s1017_s23  ;;  %v508_v40 = vrot.slane %v487_v31, 7  ;;  %v562_v41 = vrot.slane %v487_v31, 1  ;;  %v595_v18 = vrot.slane %v487_v31, 2  ;;  %v491_v32 = vrot.slane %v487_v31, 6  ;;  %958 = vmatprep.subr.bf16.mxu0 %v957_v33 }
 0x1c0   :  { %546 = vrot.lane.b32.xlu0 %v486_v39, %s1017_s23  ;;  %v507_v22 = vrot.slane %v486_v39, 7  ;;  %v561_v42 = vrot.slane %v486_v39, 1  ;;  %v594_v36 = vrot.slane %v486_v39, 2  ;;  %v490_v43 = vrot.slane %v486_v39, 6  ;;  %960 = vmatpush3.bf16.msra.mxu0 %v957_v33 }
 0x1c1   :  { %v512_v20 = vsel %vm59_vm0, %v508_v40, %v505_v3  ;;  %v566_v44 = vsel %vm188_vm6, %v562_v41, %v559_v63  ;;  %v599_v45 = vsel %vm226_vm7, %v595_v18, %v592_v6  ;;  %v495_v46 = vsel %vm68_vm1, %v491_v32, %v488_v11  ;;  %v633_v63 = vld [vmem:[%s1491_s3 + $0x20] sm:$0xff]  ;;  %962 = vmatprep.subr.bf16.mxu0 %v961_v35 }
 0x1c2   :  { %v509_v47 = vsel %vm59_vm0, %v507_v22, %v508_v40  ;;  %v513_v48 = vsel %vm134_vm9, %v512_v20, 0.0  ;;  %v563_v49 = vsel %vm188_vm6, %v561_v42, %v562_v41  ;;  %v564_v53 = vsel %vm188_vm6, %v560_v4, %v561_v42 }
 0x1c3   :  { %527 = vrot.lane.b32.xlu1 %v509_v47, %s1014_s0  ;;  %v597_v54 = vsel %vm226_vm7, %v593_v5, %v594_v36  ;;  %v510_v55 = vsel %vm59_vm0, %v506_v62, %v507_v22  ;;  %v596_v58 = vsel %vm226_vm7, %v594_v36, %v595_v18  ;;  %v492_v59 = vsel %vm68_vm1, %v490_v43, %v491_v32 }
 0x1c4   :  { %521 = vrot.lane.b32.xlu0 %v513_v48, %s1014_s0  ;;  %v496_v3 = vsel %vm113_vm13, %v495_v46, 0.0  ;;  %v953_v4 = vpack.c.bf16 %v632_v52, %v631_v50  ;;  %v493_v5 = vsel %vm68_vm1, %v489_v57, %v490_v43  ;;  %v570_v51 = vsel %vm1242_vm2, %v566_v44, 0.0  ;;  %504 = vst.msk [vmem:[#allocation3 + $0x18] sm:$0xff] %vm500_vm15, %v492_v59  ;;  %964 = vmatpush3.bf16.msra.mxu0 %v961_v35  ;;  %v756_v46 = vld [vmem:[%s1494_s6 + $0x8] sm:$0xff] }
 0x1c5   :  { %501 = vst.msk [vmem:[#allocation3] sm:$0xff] %vm500_vm15, %v496_v3  ;;  %v498_v62 = vsel %vm115_vm14, %v493_v5, 0.0  ;;  %v568_v7 = vsel %vm1164_vm8, %v564_v53, 0.0  ;;  %v601_v13 = vsel %vm1178_vm10, %v597_v54, 0.0  ;;  %vm1507_vm0 = vcmp.ge.s32.totalorder %v1121_v27, 1 }
 0x1c6   :  { %954 = vmatprep.subr.bf16.mxu1 %v953_v4  ;;  %503 = vst.msk [vmem:[#allocation3 + $0x10] sm:$0xff] %vm500_vm15, %v498_v62  ;;  %v515_v30 = vsel %vm1507_vm0, %v510_v55, 0.0  ;;  %v603_v6 = vsel %vm1256_vm3, %v599_v45, 0.0  ;;  %vm533_vm1 = vcmask 130112   ;;  %vm554_vm6 = vcmask 195712  }
 0x1c7   :  { %581 = vrot.lane.b32.xlu1 %v570_v51, %s1018_s2  ;;  %956 = vmatpush3.bf16.msra.mxu1 %v953_v4  ;;  %vm587_vm7 = vcmask 261312   ;;  %vm620_vm8 = vcmask 326912   ;;  %vm641_vm9 = vcmask 326656   ;;  %vm769_vm10 = vcmask 523264  }
 0x1c8   :  { %579 = vrot.lane.b32.xlu0 %v563_v49, %s1018_s2  ;;  %918 = vmatprep.subr.mxu1 %v633_v63  ;;  %v746_v22 = vstv %s869_s22  ;;  %vm1508_vm13 = vcmask 31744  }
 0x1c9   :  { %942 = vmatprep.mubr.msk.f32.mxu0 %vm769_vm10, %v755_v28  ;;  %vm1509_vm14 = vmmov %vm1508_vm13 }
 0x1cb   :  { %577 = vrot.lane.b32.xlu1 %v568_v7, %s1018_s2  ;;  %919 = vmatpush3.msra.mxu1 %v633_v63 }
 0x1cc   :  { %610 = vrot.lane.b32.xlu0 %v601_v13, %s1019_s9 }
 0x1cf   :  { %525 = vrot.lane.b32.xlu1 %v515_v30, %s1014_s0 }
 0x1d0   :  { %612 = vrot.lane.b32.xlu0 %v596_v58, %s1019_s9 }
 0x1d3   :  { %614 = vrot.lane.b32.xlu1 %v603_v6, %s1019_s9 }
 0x1d4   :  { %761 = vperm.xlu0 %981, %v757_v0  }
 0x1d7   :  { %766 = vperm.xlu1 %982, %v758_v37  }
 0x224   :  { %v545_v56 = vpop.permute.xlu1 %544 }
 0x225   :  { %v543_v9 = vpop.permute.xlu0 %542 }
 0x228   :  { %v524_v60 = vpop.permute.xlu1 %523 }
 0x229   :  { %535 = vst.msk [vmem:[#allocation3 + $0x8] sm:$0xff] %vm533_vm1, %v524_v60  ;;  %v576_v10 = vpop.permute.xlu0 %575 }
 0x22a   :  { %556 = vst.msk [vmem:[#allocation3 + $0x8] sm:$0xff] %vm554_vm6, %v545_v56 }
 0x22d   :  { %v609_v27 = vpop.permute.xlu0 %608 }
 0x231   :  { %v549_v57 = vpop.permute.xlu1 %548 }
 0x232   :  { %v547_v11 = vpop.permute.xlu0 %546 }
 0x235   :  { %v528_v12 = vpop.permute.xlu1 %527 }
 0x236   :  { %537 = vst.msk [vmem:[#allocation3 + $0x18] sm:$0xff] %vm533_vm1, %v528_v12  ;;  %v522_v34 = vpop.permute.xlu0 %521 }
 0x237   :  { %534 = vst.msk [vmem:[#allocation3] sm:$0xff] %vm533_vm1, %v522_v34 }
 0x238   :  { %558 = vst.msk [vmem:[#allocation3 + $0x18] sm:$0xff] %vm554_vm6, %v549_v57  ;;  %555 = vst.msk [vmem:[#allocation3] sm:$0xff] %vm554_vm6, %v543_v9 }
 0x239   :  { %588 = vst.msk [vmem:[#allocation3] sm:$0xff] %vm587_vm7, %v576_v10  ;;  %v582_v14 = vpop.permute.xlu1 %581 }
 0x23a   :  { %591 = vst.msk [vmem:[#allocation3 + $0x18] sm:$0xff] %vm587_vm7, %v582_v14  ;;  %v580_v61 = vpop.permute.xlu0 %579 }
 0x23b   :  { %621 = vst.msk [vmem:[#allocation3] sm:$0xff] %vm620_vm8, %v609_v27 }
 0x23d   :  { %v578_v15 = vpop.permute.xlu1 %577 }
 0x23e   :  { %589 = vst.msk [vmem:[#allocation3 + $0x8] sm:$0xff] %vm587_vm7, %v578_v15  ;;  %v611_v16 = vpop.permute.xlu0 %610 }
 0x23f   :  { %622 = vst.msk [vmem:[#allocation3 + $0x8] sm:$0xff] %vm620_vm8, %v611_v16 }
 0x241   :  { %v526_v17 = vpop.permute.xlu1 %525 }
 0x242   :  { %v625_v19 = vld [vmem:[#allocation3] sm:$0xff]  ;;  %536 = vst.msk [vmem:[#allocation3 + $0x10] sm:$0xff] %vm533_vm1, %v526_v17  ;;  %v613_v23 = vpop.permute.xlu0 %612 }
 0x243   :  { %920 = vmatprep.mubr.msk.f32.mxu1 %vm641_vm9, %v625_v19  ;;  %557 = vst.msk [vmem:[#allocation3 + $0x10] sm:$0xff] %vm554_vm6, %v547_v11 }
 0x244   :  { %590 = vst.msk [vmem:[#allocation3 + $0x10] sm:$0xff] %vm587_vm7, %v580_v61 }
 0x245   :  { %623 = vst.msk [vmem:[#allocation3 + $0x10] sm:$0xff] %vm620_vm8, %v613_v23  ;;  %v615_v24 = vpop.permute.xlu1 %614 }
 0x246   :  { %624 = vst.msk [vmem:[#allocation3 + $0x18] sm:$0xff] %vm620_vm8, %v615_v24  ;;  %v626_v25 = vld [vmem:[#allocation3 + $0x8] sm:$0xff] }
 0x247   :  { %921 = vmatmul.mubr.msk.f32.vlgmr.msra.gmra.mrb[4].mxu1 %vm641_vm9, %v626_v25 }
 0x24c   :  { %v627_v26 = vld [vmem:[#allocation3 + $0x10] sm:$0xff] }
 0x24d   :  { %923 = vmatprep.mubr.msk.f32.mxu1 %vm641_vm9, %v627_v26  ;;  %v628_v29 = vld [vmem:[#allocation3 + $0x18] sm:$0xff] }
 0x24e   :  { %924 = vmatmul.mubr.msk.f32.gmra.mrb[6].mxu1 %vm641_vm9, %v628_v29 }
 0x253   :  { %v762_v48 = vpop.permute.xlu0 %761 }
 0x256   :  { %v767_v47 = vpop.permute.xlu1 %766 }
 0x31a   :  { %v922_v8 = vpop.f32.mrb[4].mxu1 }
 0x31b   :  { %v726_v38 = vadd.f32 %v922_v8, %v864_v2  ;;  %v720_v31 = vpop.f32.mrb[5].mxu1 }
 0x31c   :  { %v721_v39 = vadd.f32 %v864_v2, %v720_v31 }
 0x31d   :  { %v752_v40 = vmul.f32 %v740_v21, %v726_v38 }
 0x31e   :  { %v751_v41 = vmul.f32 %v740_v21, %v721_v39 }
 0x320   :  { %v965_v18 = vpack.c.bf16 %v752_v40, %v751_v41 }
 0x321   :  { %v925_v32 = vpop.f32.mrb[6].mxu1 }
 0x322   :  { %v736_v42 = vadd.f32 %v925_v32, %v864_v2  ;;  %v730_v36 = vpop.f32.mrb[7].mxu1  ;;  %966 = vmatprep.subr.bf16.mxu0 %v965_v18 }
 0x323   :  { %v731_v43 = vadd.f32 %v864_v2, %v730_v36  ;;  %968 = vmatpush3.bf16.msra.mxu0 %v965_v18 }
 0x324   :  { %v754_v20 = vmul.f32 %v746_v22, %v736_v42 }
 0x325   :  { %v753_v44 = vmul.f32 %v746_v22, %v731_v43 }
 0x327   :  { %v969_v45 = vpack.c.bf16 %v754_v20, %v753_v44 }
 0x329   :  { %970 = vmatprep.subr.bf16.mxu0 %v969_v45 }
 0x32a   :  { %972 = vmatpush3.bf16.msra.mxu0 %v969_v45 }
 0x32d   :  { %943 = vmatmul.mubr.msk.f32.vlgmr.msra.gmra.mrb[0].mxu0 %vm769_vm10, %v756_v46 }
 0x400   :  { %v944_v49 = vpop.f32.mrb[0].mxu0 }
 0x401   :  { %v848_v50 = vadd.f32 %v944_v49, %v767_v47  ;;  %v842_v52 = vpop.f32.mrb[1].mxu0 }
 0x402   :  { %v843_v53 = vadd.f32 %v842_v52, %v762_v48 }
 0x403   :  { %852 = vst.msk [vmem:[%s1496_s8 + $0x8] sm:$0xff] %vm1508_vm13, %v848_v50 }
 0x404   :  { %851 = vst.msk [vmem:[%s1496_s8] sm:$0xff] %vm1509_vm14, %v843_v53 }
 0x405   :  { %857 = vsyncpa [#allocation5], 1 }

</bundles_post_ra>
